<compile_context>
chip_gen: v7x
topology: tpu7x:2x2x1
jax: 0.10.0
libtpu: 0.0.40
codegen_flags: <defaults>
</compile_context>

<pallas_src>
import functools

import jax
import jax.numpy as jnp
from jax.experimental import pallas as pl
from jax.experimental.pallas import tpu as pltpu

BN_EPS = 1e-5


# ----------------------------------------------------------------------------
# Kernel
# ----------------------------------------------------------------------------
def _dw_bn_relu_kernel(x_ref, w_ref, shift_ref, mask_ref, o_ref, *, shifts):
    """One grid step: Bt images, each (N, Cp) with N = H*W flattened tokens.

    x_ref    : (Bt, N, Cp)  input tokens (channels on lanes)
    w_ref    : (9, Cp)      depthwise 3x3 weights * bn_scale; row k = tap (kh, kw), k = 3*kh + kw
    shift_ref: (1, Cp)      folded bias: bn_beta + (conv_bias - bn_mean) * bn_scale
    mask_ref : (N, 4)       edge masks [has_left, has_right, has_top, has_bot]
    o_ref    : (Bt, N, Cp)  output tokens
    shifts   : static roll amounts (left, right, up, down) along the flattened
               token axis, pre-adjusted for pltpu.roll's rotation convention.
    """
    s_left, s_right, s_up, s_down = shifts

    w = w_ref[...]                                   # (9, Cp) -- read once, hoisted
    shift = shift_ref[...]                           # (1, Cp)
    m = mask_ref[...]                                # (N, 4)
    has_l = m[:, 0:1]
    has_r = m[:, 1:2]
    has_t = m[:, 2:3]
    has_b = m[:, 3:4]

    for b in range(x_ref.shape[0]):                  # static unroll over batch tile
        x = x_ref[b].astype(jnp.float32)             # (N, Cp)

        # In-row (W axis) neighbours via sublane rolls of the flattened token axis;
        # wrapped entries are exactly the row edges and get masked to zero.
        xl = pltpu.roll(x, s_left, axis=0) * has_l   # x[h, w-1]
        xr = pltpu.roll(x, s_right, axis=0) * has_r  # x[h, w+1]

        # Per-kernel-row sums evaluated at the *source* rows.
        s0 = xl * w[0:1] + x * w[1:2] + xr * w[2:3]  # kernel row 0 (from h-1)
        s1 = xl * w[3:4] + x * w[4:5] + xr * w[5:6]  # kernel row 1 (from h)
        s2 = xl * w[6:7] + x * w[7:8] + xr * w[8:9]  # kernel row 2 (from h+1)

        # Shift top/bottom row-sums into place along H (= roll by W tokens);
        # wrapped entries are exactly the h==0 / h==H-1 rows and get masked.
        acc = s1
        acc = acc + pltpu.roll(s0, s_up, axis=0) * has_t
        acc = acc + pltpu.roll(s2, s_down, axis=0) * has_b

        o_ref[b] = jnp.maximum(acc + shift, 0.0).astype(o_ref.dtype)


# ----------------------------------------------------------------------------
# Wrapper helpers
# ----------------------------------------------------------------------------
@functools.lru_cache(maxsize=None)
def _roll_is_forward() -> bool:
    """True iff pltpu.roll follows the jnp.roll convention: roll(x, 1, 0)[i] == x[i-1].

    A one-time, cached on-device probe so the conv taps never get mirrored if the
    rotation convention differs; cost is one tiny (8,128) kernel launch."""
    def probe(x_ref, o_ref):
        o_ref[...] = pltpu.roll(x_ref[...], 1, axis=0)

    x = jnp.arange(8 * 128, dtype=jnp.float32).reshape(8, 128)
    y = pl.pallas_call(probe, out_shape=jax.ShapeDtypeStruct((8, 128), jnp.float32))(x)
    return bool(jnp.asarray(y)[1, 0] == 0.0)


def _pick_block_batch(B, N, Cp, target_block_bytes=512 * 1024):
    """Batch elements per grid step: large enough to amortize per-step overhead,
    small enough to fit comfortably in VMEM, and (when B >= 2) keep >= 2 grid
    steps so the parallel batch axis can shard across v7x's two TensorCores."""
    bt = max(1, target_block_bytes // (N * Cp * 4))
    if B >= 2:
        bt = min(bt, B // 2)
    bt = max(1, min(bt, B))
    while B % bt:
        bt -= 1
    return bt


# ----------------------------------------------------------------------------
# Public wrapper
# ----------------------------------------------------------------------------
def dw_bn_relu(x, params, H, W, *, block_batch=None):
    """Pallas TPU forward of DW_bn_relu.  x: (B, N, C) with N == H*W."""
    B, N, C = x.shape
    assert N == H * W, "N must equal H*W"

    # ---- fold conv bias + eval-mode BatchNorm into the depthwise weights ----
    bn_scale = params["bn_gamma"] / jnp.sqrt(params["bn_var"] + BN_EPS)      # (C,)
    bn_shift = params["bn_beta"] + (params["dw_b"] - params["bn_mean"]) * bn_scale
    w9 = params["dw_w"][:, 0].reshape(C, 9).T * bn_scale[None, :]            # (9, C)

    # ---- pad channels to a lane-dense multiple of 128 ----
    Cp = ((C + 127) // 128) * 128
    pad_c = Cp - C
    if pad_c:
        x_in = jnp.pad(x, ((0, 0), (0, 0), (0, pad_c)))
        w9 = jnp.pad(w9, ((0, 0), (0, pad_c)))
        bn_shift = jnp.pad(bn_shift, ((0, pad_c),))
    else:
        x_in = x
    w9 = w9.astype(jnp.float32)
    shift_arr = bn_shift.reshape(1, Cp).astype(jnp.float32)

    # ---- edge masks over the flattened token axis (built once, host side) ----
    idx = jnp.arange(N, dtype=jnp.int32)
    col = idx % W
    row = idx // W
    edge = jnp.stack([col > 0, col < W - 1, row > 0, row < H - 1],
                     axis=1).astype(jnp.float32)                             # (N, 4)

    # ---- roll amounts, adjusted for the hardware rotation convention ----
    if _roll_is_forward():
        shifts = (1 % N, (N - 1) % N, W % N, (N - W) % N)
    else:
        shifts = ((N - 1) % N, 1 % N, (N - W) % N, W % N)

    # ---- batch tiling ----
    bt = _pick_block_batch(B, N, Cp) if block_batch is None else block_batch
    assert B % bt == 0, "block_batch must divide B"
    grid = (B // bt,)

    out = pl.pallas_call(
        functools.partial(_dw_bn_relu_kernel, shifts=shifts),
        out_shape=jax.ShapeDtypeStruct((B, N, Cp), x.dtype),
        grid_spec=pltpu.PrefetchScalarGridSpec(
            num_scalar_prefetch=0,
            grid=grid,
            in_specs=[
                pl.BlockSpec((bt, N, Cp), lambda b: (b, 0, 0)),   # x tile (per batch block)
                pl.BlockSpec((9, Cp), lambda b: (0, 0)),          # fused dw weights (resident)
                pl.BlockSpec((1, Cp), lambda b: (0, 0)),          # fused BN shift (resident)
                pl.BlockSpec((N, 4), lambda b: (0, 0)),           # edge masks (resident)
            ],
            out_specs=pl.BlockSpec((bt, N, Cp), lambda b: (b, 0, 0)),
        ),
        compiler_params=pltpu.CompilerParams(
            dimension_semantics=("parallel",),     # batches independent -> megacore shardable
            vmem_limit_bytes=32 * 1024 * 1024,
        ),
    )(x_in, w9, shift_arr, edge)

    return out[:, :, :C] if pad_c else out


# ----------------------------------------------------------------------------
# Deterministic parameter construction (torch-layout raw params)
# ----------------------------------------------------------------------------
def init_params(key, C):
    ks = jax.random.split(key, 6)
    dw_w = 0.2 * jax.random.normal(ks[0], (C, 1, 3, 3), jnp.float32)   # OIHW, groups=C
    dw_b = 0.05 * jax.random.normal(ks[1], (C,), jnp.float32)
    bn_gamma = 1.0 + 0.1 * jax.random.normal(ks[2], (C,), jnp.float32)
    bn_beta = 0.05 * jax.random.normal(ks[3], (C,), jnp.float32)
    bn_mean = 0.1 * jax.random.normal(ks[4], (C,), jnp.float32)
    bn_var = jnp.abs(1.0 + 0.1 * jax.random.normal(ks[5], (C,), jnp.float32))
    return dict(dw_w=dw_w, dw_b=dw_b, bn_gamma=bn_gamma, bn_beta=bn_beta,
                bn_mean=bn_mean, bn_var=bn_var)


# ----------------------------------------------------------------------------
# Pure-JAX reference (mirrors the PyTorch module, eval mode)
# ----------------------------------------------------------------------------
def reference_forward(x, p, H, W):
    B, N, C = x.shape
    img = jnp.transpose(x, (0, 2, 1)).reshape(B, C, H, W)                 # NCHW
    conv = jax.lax.conv_general_dilated(
        img, p["dw_w"], window_strides=(1, 1), padding="SAME",
        dimension_numbers=("NCHW", "OIHW", "NCHW"), feature_group_count=C)
    conv = conv + p["dw_b"][None, :, None, None]
    bn = (conv - p["bn_mean"][None, :, None, None]) / jnp.sqrt(
        p["bn_var"][None, :, None, None] + BN_EPS)
    bn = bn * p["bn_gamma"][None, :, None, None] + p["bn_beta"][None, :, None, None]
    y = jnp.maximum(bn, 0.0)
    return jnp.transpose(y.reshape(B, C, N), (0, 2, 1))                   # (B, N, C)


if __name__ == "__main__":
    B, C, H, W = 2, 64, 16, 16
    N = H * W
    key = jax.random.PRNGKey(0)
    kx, kp = jax.random.split(key)
    x = jax.random.normal(kx, (B, N, C), jnp.float32)
    params = init_params(kp, C)

    out = jax.block_until_ready(dw_bn_relu(x, params, H, W))

    ref = reference_forward(x, params, H, W)
    max_err = float(jnp.max(jnp.abs(out - ref)))
    if not bool(jnp.allclose(out, ref, rtol=1e-4, atol=1e-5)):
        raise AssertionError(f"Pallas output mismatch vs reference, max abs err={max_err}")
    print("KERNEL_OK")
</pallas_src>

<mosaic_0001>
module attributes {stable_mosaic.version = 11 : i64} {
  func.func @probe(%arg0: memref<8x128xf32, #tpu.memory_space<vmem>>, %arg1: memref<8x128xf32, #tpu.memory_space<vmem>>) attributes {dimension_semantics = [], scalar_prefetch = 0 : i64, scratch_operands = 0 : i64, tpu.core_type = #tpu.core_type<tc>} {
    %c0 = arith.constant 0 : index
    %c0_0 = arith.constant 0 : index
    %0 = vector.load %arg0[%c0, %c0_0] : memref<8x128xf32, #tpu.memory_space<vmem>>, vector<8x128xf32>
    %c1_i32 = arith.constant 1 : i32
    %1 = tpu.dynamic_rotate %0 by %c1_i32 dim 0 : vector<8x128xf32>, i32 -> vector<8x128xf32>
    %c0_1 = arith.constant 0 : index
    %c0_2 = arith.constant 0 : index
    %2 = vector.load %arg1[%c0_1, %c0_2] : memref<8x128xf32, #tpu.memory_space<vmem>>, vector<8x128xf32>
    tpu.vector_store %arg1[%c0_1, %c0_2], %1 {strides = array<i32>} : memref<8x128xf32, #tpu.memory_space<vmem>>, vector<8x128xf32>,
    return
  }
}

</mosaic_0001>

<bundles_post_ra>
// kernel: tpu_custom_call.1
= control target key start
LH: loop header
LB: loop body
LE: loop exit
PB: predicated region body
PF: predicated region fallthrough
CT: control target
= control target key end

     0   :  { %6 = vsyncpa [#allocation3], 0  ;;  %s125_s0 = inlined_call_operand.hbm [shape: f32[8,128], index: 0, kind: input, shape index: {}]   ;;  %s126_s1 = inlined_call_operand.hbm [shape: f32[8,128], index: 1, kind: output, shape index: {}]  }
   0x1   :  { %7 = vsyncpa [#allocation4], 0  ;;  %s89_s6 = smov [#allocation2]   ;;  %s41_s10 = scalar_lea.hbm %s125_s0, 128 }
   0x2   :  { %s14_s7 = sshll.u32 %s89_s6, 4  ;;  %p42_p0 = scmp.ne.s32.totalorder %s125_s0, %s41_s10  ;;  %s15_s7 = int_to_ptr.vmem [resolvable:$true] %s14_s7 }
   0x3   :  { %p45_p1 = scmp.lt.u32.totalorder %s41_s10, %s125_s0 }
   0x5   :  { %p47_p2 = pnand %p45_p1, %p42_p0 }
   0x7   :  { %50 = shalt.err (!%p47_p2)
}
   0x8   :  { %s51_s15 = scalar_lea.vmem %s15_s7, 128  ;;  %p56_p4 = scmp.lt.s32.totalorder %s15_s7, %s15_s7 }
   0x9   :  { %p52_p3 = scmp.ne.s32.totalorder %s15_s7, %s51_s15  ;;  %p57_p5 = scmp.lt.s32.totalorder %s51_s15, %s51_s15 }
   0xb   :  { %p58_p6 = por %p57_p5, %p56_p4 }
   0xd   :  { %p59_p7 = pnand %p58_p6, %p52_p3 }
   0xf   :  { %62 = shalt.err (!%p59_p7)
}
  0x10   :  { %17 = dma.hbm_to_vmem [thread:$0]  %s125_s0, 128, %s15_s7, [#allocation3]  }
  0x11   :  { %85 = dma.done.wait [#allocation3], 128  }
  0x12   :  { %86 = vsyncadd [#allocation3], 4294967168  ;;  %s90_s18 = smov [#allocation5]   ;;  %v21_v0 = vld [vmem:[#allocation2] sm:$0xff] }
  0x13   :  { %s30_s19 = sshll.u32 %s90_s18, 4  ;;  %v22_v1 = vrot.slane %v21_v0, 7  ;;  %s31_s19 = int_to_ptr.vmem [resolvable:$true] %s30_s19 }
  0x14   :  { %s63_s20 = scalar_lea.vmem %s31_s19, 128  ;;  %p68_p9 = scmp.lt.s32.totalorder %s31_s19, %s31_s19 }
  0x15   :  { %23 = vst [vmem:[#allocation5] sm:$0xff] %v22_v1  ;;  %p64_p8 = scmp.ne.s32.totalorder %s31_s19, %s63_s20  ;;  %p69_p10 = scmp.lt.s32.totalorder %s63_s20, %s63_s20 }
  0x17   :  { %p70_p11 = por %p69_p10, %p68_p9 }
  0x19   :  { %p71_p12 = pnand %p70_p11, %p64_p8 }
  0x1b   :  { %74 = shalt.err (!%p71_p12)
}
  0x1c   :  { %s75_s23 = scalar_lea.hbm %s126_s1, 128 }
  0x1d   :  { %p76_p13 = scmp.ne.s32.totalorder %s126_s1, %s75_s23  ;;  %p79_p0 = scmp.lt.u32.totalorder %s75_s23, %s126_s1 }
  0x1f   :  { %p81_p1 = pnand %p79_p0, %p76_p13 }
  0x21   :  { %84 = shalt.err (!%p81_p1)
}
  0x22   :  { %33 = dma.vmem_to_hbm [thread:$0]  %s31_s19, 128, %s126_s1, [#allocation4]  }
  0x23   :  { %87 = dma.done.wait [#allocation4], 128  }
  0x24   :  { %88 = vsyncadd [#allocation4], 4294967168 }
  0x25   :  { %37 = vsyncpa [#allocation3], 1 }
  0x26   :  { %38 = vsyncpa [#allocation4], 1 }

</bundles_post_ra>
